<compile_context>
chip_gen: v6e
topology: v6e:2x2x1
jax: 0.10.0
libtpu: 0.0.40
codegen_flags: <defaults>
</compile_context>

<pallas_src>
import functools

import jax
import jax.numpy as jnp
from jax.experimental import pallas as pl
from jax.experimental.pallas import tpu as pltpu


def _round_up(x, m):
    return ((x + m - 1) // m) * m


# ---------------------------------------------------------------------------
# Kernel 1: ternarize the (pre-transposed, padded) weight  W^T : (K, N)
#   T = +alpha_p where w >  thr
#       -alpha_n where w < -thr
#        0       otherwise            with thr = 0.05 * max(|W|)
# Padded entries are 0 and map to 0 (thr >= 0), so they never affect the matmul.
# ---------------------------------------------------------------------------
def ttq_ternarize_kernel(scal_ref, w_ref, t_ref):
    thr = scal_ref[0]       # 0.05 * max|W|
    alpha_p = scal_ref[1]
    alpha_n = scal_ref[2]
    w = w_ref[...]
    # Direct scalar broadcasts inside where (no full_like * alpha multiplies).
    tern = jnp.where(w > thr, alpha_p,
                     jnp.where(w < -thr, -alpha_n, jnp.float32(0.0)))
    t_ref[...] = tern.astype(t_ref.dtype)


# ---------------------------------------------------------------------------
# Kernel 2: tiled matmul + bias:  y[M, N] = x[M, K] @ T[K, N] + b[N]
# grid = (M/tm, N/tn, K/tk); f32 accumulator scratch; bias added only at k==last.
# ---------------------------------------------------------------------------
def ttq_matmul_kernel(x_ref, t_ref, b_ref, o_ref, acc_ref):
    k = pl.program_id(2)

    @pl.when(k == 0)
    def _():
        acc_ref[...] = jnp.zeros_like(acc_ref)

    acc_ref[...] += jnp.dot(x_ref[...], t_ref[...],
                            preferred_element_type=jnp.float32)

    @pl.when(k == pl.num_programs(2) - 1)
    def _():
        o_ref[...] = (acc_ref[...] + b_ref[...]).astype(o_ref.dtype)


@functools.partial(jax.jit, static_argnames=("compute_dtype",))
def ttq_linear(x, weight, alpha_p, alpha_n, bias=None, *,
               compute_dtype=jnp.float32):
    """x: (B, in_f) f32, weight: (out_f, in_f) f32, alpha_*: (1,), bias: (out_f,)."""
    B, in_f = x.shape
    out_f = weight.shape[0]
    if bias is None:
        bias = jnp.zeros((out_f,), dtype=jnp.float32)

    # Global abs-max over the weight (cheap XLA reduction), folded into the
    # threshold so the kernel never divides.
    max_w = jnp.max(jnp.abs(weight)).astype(jnp.float32)
    scalars = jnp.stack([0.05 * max_w,
                         alpha_p.reshape(()).astype(jnp.float32),
                         alpha_n.reshape(()).astype(jnp.float32)])

    # Tile sizes: lane-dense N and K (128-multiples), M a multiple of 8.
    # Caps chosen so the double-buffered working set stays far below the
    # 32 MiB default scoped VMEM (safe on v5e / v6e / v7x).
    tm = min(256, _round_up(B, 8))
    tn = min(256, _round_up(out_f, 128))
    tk = min(512, _round_up(in_f, 128))

    M = _round_up(B, tm)
    N = _round_up(out_f, tn)
    K = _round_up(in_f, tk)

    # Pre-transpose + zero-pad in the wrapper (layout plumbing, not compute).
    wt = jnp.pad(jnp.transpose(weight).astype(jnp.float32),
                 ((0, K - in_f), (0, N - out_f)))                 # (K, N)
    xp = jnp.pad(x.astype(jnp.float32), ((0, M - B), (0, K - in_f)))   # (M, K)
    bp = jnp.pad(bias.astype(jnp.float32), (0, N - out_f)).reshape(1, N)

    # --- pass 1: quantize the weight once (W read from HBM exactly once) ---
    tq_k = min(512, K)
    tq_n = min(256, N)
    tern = pl.pallas_call(
        ttq_ternarize_kernel,
        out_shape=jax.ShapeDtypeStruct((K, N), compute_dtype),
        grid_spec=pltpu.PrefetchScalarGridSpec(
            num_scalar_prefetch=1,                       # scalars -> SMEM
            grid=(K // tq_k, N // tq_n),
            in_specs=[pl.BlockSpec((tq_k, tq_n), lambda i, j, s: (i, j))],
            out_specs=pl.BlockSpec((tq_k, tq_n), lambda i, j, s: (i, j)),
        ),
        compiler_params=pltpu.CompilerParams(
            dimension_semantics=("parallel", "parallel")),
    )(scalars, wt)

    # --- pass 2: tiled matmul + bias ---
    cost = pl.CostEstimate(
        flops=2 * M * N * K,
        transcendentals=0,
        bytes_accessed=4 * (M * K + M * N) + jnp.dtype(compute_dtype).itemsize * K * N,
    )
    out = pl.pallas_call(
        ttq_matmul_kernel,
        out_shape=jax.ShapeDtypeStruct((M, N), jnp.float32),
        grid_spec=pltpu.PrefetchScalarGridSpec(
            num_scalar_prefetch=0,
            grid=(M // tm, N // tn, K // tk),
            in_specs=[
                pl.BlockSpec((tm, tk), lambda i, j, k: (i, k)),   # x
                pl.BlockSpec((tk, tn), lambda i, j, k: (k, j)),   # T (K, N)
                pl.BlockSpec((1, tn), lambda i, j, k: (0, j)),    # bias
            ],
            out_specs=pl.BlockSpec((tm, tn), lambda i, j, k: (i, j)),
            scratch_shapes=[pltpu.VMEM((tm, tn), jnp.float32)],
        ),
        compiler_params=pltpu.CompilerParams(
            dimension_semantics=("parallel", "parallel", "arbitrary")),
        cost_estimate=cost,
    )(xp.astype(compute_dtype), tern, bp)

    return out[:B, :out_f]


def ttq_linear_ref(x, weight, alpha_p, alpha_n, bias):
    """Pure-JAX reference of the PyTorch forward pass (for validation)."""
    max_w = jnp.max(jnp.abs(weight))
    nw = jnp.where(max_w > 0, weight / max_w, weight)
    t = 0.05
    tern = jnp.where(nw > t, alpha_p[0], jnp.where(nw < -t, -alpha_n[0], 0.0))
    return x @ tern.T + bias[None, :]


if __name__ == "__main__":
    key = jax.random.PRNGKey(0)
    k_x, k_w, k_b = jax.random.split(key, 3)

    batch, in_features, out_features = 8, 32, 64

    x = jax.random.normal(k_x, (batch, in_features), dtype=jnp.float32)
    weight = jax.random.normal(k_w, (out_features, in_features), dtype=jnp.float32)
    bias = jax.random.normal(k_b, (out_features,), dtype=jnp.float32)
    alpha_p = jnp.ones((1,), dtype=jnp.float32)
    alpha_n = jnp.ones((1,), dtype=jnp.float32)

    y = ttq_linear(x, weight, alpha_p, alpha_n, bias)
    y = jax.block_until_ready(y)

    y_ref = ttq_linear_ref(x, weight, alpha_p, alpha_n, bias)
    assert y.shape == (batch, out_features)
    assert jnp.allclose(y, y_ref, atol=1e-5, rtol=1e-5), "mismatch vs reference"

    print("KERNEL_OK")
</pallas_src>

<mosaic_0001>
module attributes {stable_mosaic.version = 11 : i64} {
  func.func @ttq_ternarize_kernel(%arg0: i32, %arg1: i32, %arg2: memref<3xf32, #tpu.memory_space<smem>>, %arg3: memref<128x128xf32, #tpu.memory_space<vmem>>, %arg4: memref<128x128xf32, #tpu.memory_space<vmem>>) attributes {dimension_semantics = [#tpu.dimension_semantics<parallel>, #tpu.dimension_semantics<parallel>], iteration_bounds = array<i64: 1, 1>, scalar_prefetch = 1 : i64, scratch_operands = 0 : i64, tpu.core_type = #tpu.core_type<tc>, window_params = [{transform_indices = @transform_0, window_bounds = array<i64: 128, 128>}, {transform_indices = @transform_1, window_bounds = array<i64: 128, 128>}]} {
    %c0 = arith.constant 0 : index
    %0 = memref.load %arg2[%c0] : memref<3xf32, #tpu.memory_space<smem>>
    %c1 = arith.constant 1 : index
    %1 = memref.load %arg2[%c1] : memref<3xf32, #tpu.memory_space<smem>>
    %c2 = arith.constant 2 : index
    %2 = memref.load %arg2[%c2] : memref<3xf32, #tpu.memory_space<smem>>
    %c0_0 = arith.constant 0 : index
    %c0_1 = arith.constant 0 : index
    %3 = vector.load %arg3[%c0_0, %c0_1] : memref<128x128xf32, #tpu.memory_space<vmem>>, vector<128x128xf32>
    %4 = vector.broadcast %0 : f32 to vector<128x128xf32>
    %5 = arith.cmpf ogt, %3, %4 : vector<128x128xf32>
    %cst = arith.constant 0.000000e+00 : f32
    %6 = arith.subf %cst, %0 : f32
    %7 = vector.broadcast %6 : f32 to vector<128x128xf32>
    %8 = arith.cmpf olt, %3, %7 : vector<128x128xf32>
    %cst_2 = arith.constant 0.000000e+00 : f32
    %9 = arith.subf %cst_2, %2 : f32
    %cst_3 = arith.constant 0.000000e+00 : f32
    %10 = vector.broadcast %9 : f32 to vector<128x128xf32>
    %11 = vector.broadcast %cst_3 : f32 to vector<128x128xf32>
    %12 = arith.select %8, %10, %11 : vector<128x128xi1>, vector<128x128xf32>
    %13 = vector.broadcast %1 : f32 to vector<128x128xf32>
    %14 = arith.select %5, %13, %12 : vector<128x128xi1>, vector<128x128xf32>
    %c0_4 = arith.constant 0 : index
    %c0_5 = arith.constant 0 : index
    %15 = vector.load %arg4[%c0_4, %c0_5] : memref<128x128xf32, #tpu.memory_space<vmem>>, vector<128x128xf32>
    tpu.vector_store %arg4[%c0_4, %c0_5], %14 {strides = array<i32>} : memref<128x128xf32, #tpu.memory_space<vmem>>, vector<128x128xf32>,
    return
  }
  func.func @transform_0(%arg0: i32, %arg1: i32, %arg2: memref<3xf32, #tpu.memory_space<smem>>) -> (i32, i32) {
    %c0_i32 = arith.constant 0 : i32
    return %arg0, %arg1 : i32, i32
  }
  func.func @transform_1(%arg0: i32, %arg1: i32, %arg2: memref<3xf32, #tpu.memory_space<smem>>) -> (i32, i32) {
    %c0_i32 = arith.constant 0 : i32
    return %arg0, %arg1 : i32, i32
  }
}

module attributes {stable_mosaic.version = 11 : i64} {
  func.func @ttq_matmul_kernel(%arg0: i32, %arg1: i32, %arg2: i32, %arg3: memref<8x128xf32, #tpu.memory_space<vmem>>, %arg4: memref<128x128xf32, #tpu.memory_space<vmem>>, %arg5: memref<1x128xf32, #tpu.memory_space<vmem>>, %arg6: memref<8x128xf32, #tpu.memory_space<vmem>>, %arg7: memref<8x128xf32, #tpu.memory_space<vmem>>) attributes {dimension_semantics = [#tpu.dimension_semantics<parallel>, #tpu.dimension_semantics<parallel>, #tpu.dimension_semantics<arbitrary>], iteration_bounds = array<i64: 1, 1, 1>, scalar_prefetch = 0 : i64, scratch_operands = 1 : i64, tpu.core_type = #tpu.core_type<tc>, window_params = [{transform_indices = @transform_0, window_bounds = array<i64: 8, 128>}, {transform_indices = @transform_1, window_bounds = array<i64: 128, 128>}, {transform_indices = @transform_2, window_bounds = array<i64: 1, 128>}, {transform_indices = @transform_3, window_bounds = array<i64: 8, 128>}]} {
    %c0_i32 = arith.constant 0 : i32
    %0 = arith.cmpi eq, %arg2, %c0_i32 : i32
    %1 = arith.extui %0 : i1 to i32
    %c0_i32_0 = arith.constant 0 : i32
    %2 = arith.cmpi ne, %1, %c0_i32_0 : i32
    scf.if %2 {
      %cst_10 = arith.constant 0.000000e+00 : f32
      %12 = vector.broadcast %cst_10 : f32 to vector<8x128xf32>
      %c0_11 = arith.constant 0 : index
      %c0_12 = arith.constant 0 : index
      %13 = vector.load %arg7[%c0_11, %c0_12] : memref<8x128xf32, #tpu.memory_space<vmem>>, vector<8x128xf32>
      tpu.vector_store %arg7[%c0_11, %c0_12], %12 {strides = array<i32>} : memref<8x128xf32, #tpu.memory_space<vmem>>, vector<8x128xf32>,
    } else {
    }
    %c0 = arith.constant 0 : index
    %c0_1 = arith.constant 0 : index
    %3 = vector.load %arg7[%c0, %c0_1] : memref<8x128xf32, #tpu.memory_space<vmem>>, vector<8x128xf32>
    %c0_2 = arith.constant 0 : index
    %c0_3 = arith.constant 0 : index
    %4 = vector.load %arg3[%c0_2, %c0_3] : memref<8x128xf32, #tpu.memory_space<vmem>>, vector<8x128xf32>
    %c0_4 = arith.constant 0 : index
    %c0_5 = arith.constant 0 : index
    %5 = vector.load %arg4[%c0_4, %c0_5] : memref<128x128xf32, #tpu.memory_space<vmem>>, vector<128x128xf32>
    %cst = arith.constant dense<0.000000e+00> : vector<8x128xf32>
    %6 = tpu.matmul %4, %5, %cst {dimension_numbers = #tpu.dot_dimension_numbers<[1], [0], [0], [1], [0, 0, 1, 1], [], []>} : vector<8x128xf32>, vector<128x128xf32>, vector<8x128xf32> -> vector<8x128xf32>
    %7 = arith.addf %3, %6 : vector<8x128xf32>
    %c0_6 = arith.constant 0 : index
    %c0_7 = arith.constant 0 : index
    %8 = vector.load %arg7[%c0_6, %c0_7] : memref<8x128xf32, #tpu.memory_space<vmem>>, vector<8x128xf32>
    tpu.vector_store %arg7[%c0_6, %c0_7], %7 {strides = array<i32>} : memref<8x128xf32, #tpu.memory_space<vmem>>, vector<8x128xf32>,
    %c0_i32_8 = arith.constant 0 : i32
    %9 = arith.cmpi eq, %arg2, %c0_i32_8 : i32
    %10 = arith.extui %9 : i1 to i32
    %c0_i32_9 = arith.constant 0 : i32
    %11 = arith.cmpi ne, %10, %c0_i32_9 : i32
    scf.if %11 {
      %c0_10 = arith.constant 0 : index
      %c0_11 = arith.constant 0 : index
      %12 = vector.load %arg7[%c0_10, %c0_11] : memref<8x128xf32, #tpu.memory_space<vmem>>, vector<8x128xf32>
      %c0_12 = arith.constant 0 : index
      %c0_13 = arith.constant 0 : index
      %13 = vector.load %arg5[%c0_12, %c0_13] : memref<1x128xf32, #tpu.memory_space<vmem>>, vector<1x128xf32>
      %14 = vector.broadcast %13 : vector<1x128xf32> to vector<8x128xf32>
      %15 = arith.addf %12, %14 : vector<8x128xf32>
      %c0_14 = arith.constant 0 : index
      %c0_15 = arith.constant 0 : index
      %16 = vector.load %arg6[%c0_14, %c0_15] : memref<8x128xf32, #tpu.memory_space<vmem>>, vector<8x128xf32>
      tpu.vector_store %arg6[%c0_14, %c0_15], %15 {strides = array<i32>} : memref<8x128xf32, #tpu.memory_space<vmem>>, vector<8x128xf32>,
    } else {
    }
    return
  }
  func.func @transform_0(%arg0: i32, %arg1: i32, %arg2: i32) -> (i32, i32) {
    %c0_i32 = arith.constant 0 : i32
    return %arg0, %arg2 : i32, i32
  }
  func.func @transform_1(%arg0: i32, %arg1: i32, %arg2: i32) -> (i32, i32) {
    %c0_i32 = arith.constant 0 : i32
    return %arg2, %arg1 : i32, i32
  }
  func.func @transform_2(%arg0: i32, %arg1: i32, %arg2: i32) -> (i32, i32) {
    %c0_i32 = arith.constant 0 : i32
    %c0_i32_0 = arith.constant 0 : i32
    return %c0_i32, %arg1 : i32, i32
  }
  func.func @transform_3(%arg0: i32, %arg1: i32, %arg2: i32) -> (i32, i32) {
    %c0_i32 = arith.constant 0 : i32
    return %arg0, %arg1 : i32, i32
  }
}

</mosaic_0001>

<bundles_post_ra>
// kernel: ttq_linear.2
= control target key start
LH: loop header
LB: loop body
LE: loop exit
PB: predicated region body
PF: predicated region fallthrough
CT: control target
= control target key end

     0   :  { %s346_s0 = inlined_call_operand.vmem [shape: f32[3], index: 0, kind: input, shape index: {}]   ;;  %s347_s1 = inlined_call_operand.vmem [shape: f32[128,128], index: 1, kind: input, shape index: {}]   ;;  %s348_s2 = inlined_call_operand.vmem [shape: f32[128,128], index: 2, kind: output, shape index: {}]  }
   0x1   :  { %s7_s11 = sshll.u32 %s346_s0, 4  ;;  %s8_s11 = int_to_ptr.vmem [resolvable:$true] %s7_s11 }
   0x2   :  { %s127_s12 = scalar_lea.vmem %s8_s11, 16  ;;  %p132_p1 = scmp.lt.s32.totalorder %s8_s11, %s8_s11 }
   0x3   :  { %p128_p0 = scmp.ne.s32.totalorder %s8_s11, %s127_s12  ;;  %p133_p2 = scmp.lt.s32.totalorder %s127_s12, %s127_s12 }
   0x5   :  { %p134_p3 = por %p133_p2, %p132_p1 }
   0x7   :  { %p135_p4 = pnand %p134_p3, %p128_p0 }
   0x9   :  { %138 = shalt.err (!%p135_p4)  }
   0xa   :  { %s141_s13 = smov [#allocation3]  }
   0xb   :  { %10 = dma.vmem_to_smem %s8_s11, 16, %s141_s13, [#allocation2] }
   0xc   :  { %139 = dma.done.wait [#allocation2], 16 }
   0xd   :  { %140 = vsyncadd [#allocation2], 4294967280 }
   0xe   :  { %12 = sfence }
   0xf   :  { %s15_s14 = sld [smem:[#allocation3]]  ;;  %v18_v0 = vld [vmem:[%s347_s1] sm:$0xff]  ;;  %v19_v1 = vld [vmem:[%s347_s1 + $0x8] sm:$0xff]  ;;  %v20_v2 = vld [vmem:[%s347_s1 + $0x10] sm:$0xff] }
  0x10   :  { %s124_s15 = sld [smem:[#allocation3 + $0x1]]  ;;  %v21_v3 = vld [vmem:[%s347_s1 + $0x18] sm:$0xff]  ;;  %v22_v4 = vld [vmem:[%s347_s1 + $0x20] sm:$0xff]  ;;  %v23_v5 = vld [vmem:[%s347_s1 + $0x28] sm:$0xff] }
  0x11   :  { %s125_s16 = sld [smem:[#allocation3 + $0x2]]  ;;  %v24_v8 = vld [vmem:[%s347_s1 + $0x30] sm:$0xff]  ;;  %v25_v11 = vld [vmem:[%s347_s1 + $0x38] sm:$0xff]  ;;  %v26_v20 = vld [vmem:[%s347_s1 + $0x40] sm:$0xff] }
  0x12   :  { %v27_v23 = vld [vmem:[%s347_s1 + $0x48] sm:$0xff]  ;;  %v28_v27 = vld [vmem:[%s347_s1 + $0x50] sm:$0xff]  ;;  %v29_v30 = vld [vmem:[%s347_s1 + $0x58] sm:$0xff] }
  0x13   :  { %v30_v33 = vld [vmem:[%s347_s1 + $0x60] sm:$0xff]  ;;  %v31_v36 = vld [vmem:[%s347_s1 + $0x68] sm:$0xff]  ;;  %v32_v39 = vld [vmem:[%s347_s1 + $0x70] sm:$0xff] }
  0x14   :  { %v33_v42 = vld [vmem:[%s347_s1 + $0x78] sm:$0xff] }
  0x15   :  { %v178_v6 = vstv %s15_s14  ;;  %s51_s28 = ssub.f32 0.0, %s15_s14 }
  0x16   :  { %vm35_vm0 = vcmp.gt.f32.partialorder %v18_v0, %v178_v6  ;;  %v181_v7 = vstv %s124_s15  ;;  %vm36_vm1 = vcmp.gt.f32.partialorder %v19_v1, %v178_v6  ;;  %vm37_vm2 = vcmp.gt.f32.partialorder %v20_v2, %v178_v6 }
  0x17   :  { %v188_v9 = vstv %s51_s28  ;;  %s69_s3 = ssub.f32 0.0, %s125_s16  ;;  %vm38_vm3 = vcmp.gt.f32.partialorder %v21_v3, %v178_v6  ;;  %vm39_vm4 = vcmp.gt.f32.partialorder %v22_v4, %v178_v6  ;;  %vm40_vm5 = vcmp.gt.f32.partialorder %v23_v5, %v178_v6 }
  0x18   :  { %vm53_vm6 = vcmp.lt.f32.partialorder %v18_v0, %v188_v9  ;;  %vm54_vm7 = vcmp.lt.f32.partialorder %v19_v1, %v188_v9  ;;  %vm55_vm8 = vcmp.lt.f32.partialorder %v20_v2, %v188_v9  ;;  %vm56_vm9 = vcmp.lt.f32.partialorder %v21_v3, %v188_v9 }
  0x19   :  { %v197_v10 = vstv %s69_s3  ;;  %vm57_vm10 = vcmp.lt.f32.partialorder %v22_v4, %v188_v9  ;;  %vm58_vm11 = vcmp.lt.f32.partialorder %v23_v5, %v188_v9  ;;  %vm41_vm12 = vcmp.gt.f32.partialorder %v24_v8, %v178_v6 }
  0x1a   :  { %v71_v12 = vsel %vm53_vm6, %v197_v10, 0.0  ;;  %v72_v13 = vsel %vm54_vm7, %v197_v10, 0.0  ;;  %v73_v14 = vsel %vm55_vm8, %v197_v10, 0.0  ;;  %v74_v15 = vsel %vm56_vm9, %v197_v10, 0.0 }
  0x1b   :  { %v88_v16 = vsel %vm35_vm0, %v181_v7, %v71_v12  ;;  %v89_v17 = vsel %vm36_vm1, %v181_v7, %v72_v13  ;;  %v90_v18 = vsel %vm37_vm2, %v181_v7, %v73_v14  ;;  %v91_v19 = vsel %vm38_vm3, %v181_v7, %v74_v15 }
  0x1c   :  { %104 = vst [vmem:[%s348_s2] sm:$0xff] %v88_v16  ;;  %105 = vst [vmem:[%s348_s2 + $0x8] sm:$0xff] %v89_v17  ;;  %v75_v21 = vsel %vm57_vm10, %v197_v10, 0.0  ;;  %v76_v22 = vsel %vm58_vm11, %v197_v10, 0.0  ;;  %vm59_vm13 = vcmp.lt.f32.partialorder %v24_v8, %v188_v9  ;;  %vm42_vm14 = vcmp.gt.f32.partialorder %v25_v11, %v178_v6 }
  0x1d   :  { %106 = vst [vmem:[%s348_s2 + $0x10] sm:$0xff] %v90_v18  ;;  %107 = vst [vmem:[%s348_s2 + $0x18] sm:$0xff] %v91_v19  ;;  %v92_v24 = vsel %vm39_vm4, %v181_v7, %v75_v21  ;;  %v93_v25 = vsel %vm40_vm5, %v181_v7, %v76_v22  ;;  %v77_v26 = vsel %vm59_vm13, %v197_v10, 0.0  ;;  %vm60_vm15 = vcmp.lt.f32.partialorder %v25_v11, %v188_v9 }
  0x1e   :  { %108 = vst [vmem:[%s348_s2 + $0x20] sm:$0xff] %v92_v24  ;;  %109 = vst [vmem:[%s348_s2 + $0x28] sm:$0xff] %v93_v25  ;;  %v94_v28 = vsel %vm41_vm12, %v181_v7, %v77_v26  ;;  %v78_v29 = vsel %vm60_vm15, %v197_v10, 0.0  ;;  %vm43_vm0 = vcmp.gt.f32.partialorder %v26_v20, %v178_v6  ;;  %vm61_vm1 = vcmp.lt.f32.partialorder %v26_v20, %v188_v9 }
  0x1f   :  { %110 = vst [vmem:[%s348_s2 + $0x30] sm:$0xff] %v94_v28  ;;  %v95_v31 = vsel %vm42_vm14, %v181_v7, %v78_v29  ;;  %v79_v32 = vsel %vm61_vm1, %v197_v10, 0.0  ;;  %vm44_vm2 = vcmp.gt.f32.partialorder %v27_v23, %v178_v6  ;;  %vm62_vm3 = vcmp.lt.f32.partialorder %v27_v23, %v188_v9 }
  0x20   :  { %111 = vst [vmem:[%s348_s2 + $0x38] sm:$0xff] %v95_v31  ;;  %v96_v34 = vsel %vm43_vm0, %v181_v7, %v79_v32  ;;  %v80_v35 = vsel %vm62_vm3, %v197_v10, 0.0  ;;  %vm45_vm4 = vcmp.gt.f32.partialorder %v28_v27, %v178_v6  ;;  %vm63_vm5 = vcmp.lt.f32.partialorder %v28_v27, %v188_v9 }
  0x21   :  { %112 = vst [vmem:[%s348_s2 + $0x40] sm:$0xff] %v96_v34  ;;  %v97_v37 = vsel %vm44_vm2, %v181_v7, %v80_v35  ;;  %v81_v38 = vsel %vm63_vm5, %v197_v10, 0.0  ;;  %vm46_vm6 = vcmp.gt.f32.partialorder %v29_v30, %v178_v6  ;;  %vm64_vm7 = vcmp.lt.f32.partialorder %v29_v30, %v188_v9 }
  0x22   :  { %113 = vst [vmem:[%s348_s2 + $0x48] sm:$0xff] %v97_v37  ;;  %v98_v40 = vsel %vm45_vm4, %v181_v7, %v81_v38  ;;  %v82_v41 = vsel %vm64_vm7, %v197_v10, 0.0  ;;  %vm47_vm8 = vcmp.gt.f32.partialorder %v30_v33, %v178_v6  ;;  %vm65_vm9 = vcmp.lt.f32.partialorder %v30_v33, %v188_v9 }
  0x23   :  { %114 = vst [vmem:[%s348_s2 + $0x50] sm:$0xff] %v98_v40  ;;  %v99_v43 = vsel %vm46_vm6, %v181_v7, %v82_v41  ;;  %v83_v44 = vsel %vm65_vm9, %v197_v10, 0.0  ;;  %vm48_vm10 = vcmp.gt.f32.partialorder %v31_v36, %v178_v6  ;;  %vm66_vm11 = vcmp.lt.f32.partialorder %v31_v36, %v188_v9 }
  0x24   :  { %115 = vst [vmem:[%s348_s2 + $0x58] sm:$0xff] %v99_v43  ;;  %v100_v45 = vsel %vm47_vm8, %v181_v7, %v83_v44  ;;  %v84_v46 = vsel %vm66_vm11, %v197_v10, 0.0  ;;  %vm49_vm12 = vcmp.gt.f32.partialorder %v32_v39, %v178_v6  ;;  %vm67_vm13 = vcmp.lt.f32.partialorder %v32_v39, %v188_v9 }
  0x25   :  { %116 = vst [vmem:[%s348_s2 + $0x60] sm:$0xff] %v100_v45  ;;  %v101_v47 = vsel %vm48_vm10, %v181_v7, %v84_v46  ;;  %v85_v48 = vsel %vm67_vm13, %v197_v10, 0.0  ;;  %vm50_vm14 = vcmp.gt.f32.partialorder %v33_v42, %v178_v6  ;;  %vm68_vm15 = vcmp.lt.f32.partialorder %v33_v42, %v188_v9 }
  0x26   :  { %117 = vst [vmem:[%s348_s2 + $0x68] sm:$0xff] %v101_v47  ;;  %v102_v49 = vsel %vm49_vm12, %v181_v7, %v85_v48  ;;  %v86_v50 = vsel %vm68_vm15, %v197_v10, 0.0 }
  0x27   :  { %118 = vst [vmem:[%s348_s2 + $0x70] sm:$0xff] %v102_v49  ;;  %v103_v51 = vsel %vm50_vm14, %v181_v7, %v86_v50 }
  0x28   :  { %119 = vst [vmem:[%s348_s2 + $0x78] sm:$0xff] %v103_v51 }

// kernel: ttq_linear.3
= control target key start
LH: loop header
LB: loop body
LE: loop exit
PB: predicated region body
PF: predicated region fallthrough
CT: control target
= control target key end

     0   :  { %v215_v1 = vmov 0.0   ;;  %vm216_vm0 = vmmov 0   ;;  %s295_s0 = inlined_call_operand.vmem [shape: f32[8,128], index: 0, kind: input, shape index: {}]   ;;  %s296_s1 = inlined_call_operand.vmem [shape: f32[128,128], index: 1, kind: input, shape index: {}]   ;;  %s297_s2 = inlined_call_operand.vmem [shape: f32[1,128], index: 2, kind: input, shape index: {}]   ;;  %s298_s3 = inlined_call_operand.hbm [shape: f32[8,128], index: 3, kind: output, shape index: {}]  }
   0x1   :  { %v37_v0 = vld [vmem:[%s296_s1 + $0x78] sm:$0xff]  ;;  %155 = vmatprep.subr.mxu0 %v215_v1  ;;  %v36_v2 = vld [vmem:[%s296_s1 + $0x70] sm:$0xff]  ;;  %187 = vmatprep.mubr.msk.f32.mxu0 %vm216_vm0, %v215_v1  ;;  %v35_v3 = vld [vmem:[%s296_s1 + $0x68] sm:$0xff] }
   0x2   :  { %156 = vmatpush3.msra.mxu0 %v37_v0  ;;  %v34_v4 = vld [vmem:[%s296_s1 + $0x60] sm:$0xff] }
   0x3   :  { %157 = vmatprep.subr.mxu0 %v215_v1 }
   0x4   :  { %158 = vmatpush3.msra.mxu0 %v36_v2 }
   0x5   :  { %159 = vmatprep.subr.mxu0 %v215_v1 }
   0x6   :  { %8 = vsyncpa [#allocation4], 0  ;;  %160 = vmatpush3.msra.mxu0 %v35_v3  ;;  %v33_v5 = vld [vmem:[%s296_s1 + $0x58] sm:$0xff]  ;;  %v32_v6 = vld [vmem:[%s296_s1 + $0x50] sm:$0xff]  ;;  %s217_s21 = smov [#allocation3]  }
   0x7   :  { %161 = vmatprep.subr.mxu0 %v215_v1  ;;  %v31_v7 = vld [vmem:[%s296_s1 + $0x48] sm:$0xff]  ;;  %v30_v8 = vld [vmem:[%s296_s1 + $0x40] sm:$0xff]  ;;  %v29_v9 = vld [vmem:[%s296_s1 + $0x38] sm:$0xff]  ;;  %s129_s22 = sshll.u32 %s217_s21, 4  ;;  %s130_s22 = int_to_ptr.vmem [resolvable:$true] %s129_s22 }
   0x8   :  { %162 = vmatpush3.msra.mxu0 %v34_v4  ;;  %v28_v10 = vld [vmem:[%s296_s1 + $0x30] sm:$0xff]  ;;  %v27_v11 = vld [vmem:[%s296_s1 + $0x28] sm:$0xff]  ;;  %v26_v12 = vld [vmem:[%s296_s1 + $0x20] sm:$0xff]  ;;  %p198_p1 = scmp.lt.s32.totalorder %s130_s22, %s130_s22 }
   0x9   :  { %163 = vmatprep.subr.mxu0 %v215_v1  ;;  %v25_v13 = vld [vmem:[%s296_s1 + $0x18] sm:$0xff]  ;;  %v24_v14 = vld [vmem:[%s296_s1 + $0x10] sm:$0xff]  ;;  %v23_v15 = vld [vmem:[%s296_s1 + $0x8] sm:$0xff] }
   0xa   :  { %164 = vmatpush3.msra.mxu0 %v33_v5  ;;  %v22_v16 = vld [vmem:[%s296_s1] sm:$0xff]  ;;  %s193_s1 = scalar_lea.vmem %s130_s22, 128 }
   0xb   :  { %165 = vmatprep.subr.mxu0 %v215_v1  ;;  %v21_v17 = vld [vmem:[%s295_s0] sm:$0xff]  ;;  %p194_p0 = scmp.ne.s32.totalorder %s130_s22, %s193_s1  ;;  %p199_p2 = scmp.lt.s32.totalorder %s193_s1, %s193_s1 }
   0xc   :  { %166 = vmatpush3.msra.mxu0 %v32_v6  ;;  %v137_v18 = vld [vmem:[%s297_s2] ss:$0 sm:$0xff] }
   0xd   :  { %167 = vmatprep.subr.mxu0 %v215_v1  ;;  %p200_p3 = por %p199_p2, %p198_p1 }
   0xe   :  { %168 = vmatpush3.msra.mxu0 %v31_v7 }
   0xf   :  { %169 = vmatprep.subr.mxu0 %v215_v1  ;;  %p201_p4 = pnand %p200_p3, %p194_p0 }
  0x10   :  { %170 = vmatpush3.msra.mxu0 %v30_v8 }
  0x11   :  { %171 = vmatprep.subr.mxu0 %v215_v1 }
  0x12   :  { %172 = vmatpush3.msra.mxu0 %v29_v9 }
  0x13   :  { %173 = vmatprep.subr.mxu0 %v215_v1 }
  0x14   :  { %174 = vmatpush3.msra.mxu0 %v28_v10 }
  0x15   :  { %175 = vmatprep.subr.mxu0 %v215_v1 }
  0x16   :  { %176 = vmatpush3.msra.mxu0 %v27_v11 }
  0x17   :  { %177 = vmatprep.subr.mxu0 %v215_v1 }
  0x18   :  { %178 = vmatpush3.msra.mxu0 %v26_v12 }
  0x19   :  { %179 = vmatprep.subr.mxu0 %v215_v1 }
  0x1a   :  { %180 = vmatpush3.msra.mxu0 %v25_v13 }
  0x1b   :  { %181 = vmatprep.subr.mxu0 %v215_v1 }
  0x1c   :  { %182 = vmatpush3.msra.mxu0 %v24_v14 }
  0x1d   :  { %183 = vmatprep.subr.mxu0 %v215_v1 }
  0x1e   :  { %184 = vmatpush3.msra.mxu0 %v23_v15 }
  0x1f   :  { %185 = vmatprep.subr.mxu0 %v215_v1 }
  0x20   :  { %186 = vmatpush3.msra.mxu0 %v22_v16 }
  0x21   :  { %188 = vmatmul.mubr.f32.vlgmr.msra.gmra.mxu0 %v21_v17 }
  0xe1   :  { %v104_v19 = vpop.f32.mrf.mxu0 }
  0xe2   :  { %v121_v20 = vadd.f32 %v137_v18, %v104_v19 }
  0xe3   :  { %v189_v21 = vpop.f32.mrf.mxu0 }
  0xe4   :  { %122 = vst [vmem:[#allocation3] sm:$0xff] %v121_v20 }
  0xe5   :  { %204 = shalt.err (!%p201_p4)
}
  0xe6   :  { %132 = dma.vmem_to_hbm [thread:$0]  %s130_s22, 128, %s298_s3, [#allocation4]  }
  0xe7   :  { %213 = dma.done.wait [#allocation4], 128  }
  0xe8   :  { %214 = vsyncadd [#allocation4], 4294967168 }
  0xe9   :  { %136 = vsyncpa [#allocation4], 1 }

</bundles_post_ra>
